<compile_context>
chip_gen: v7x
topology: tpu7x:2x2x1
jax: 0.10.0
libtpu: 0.0.40
codegen_flags: <defaults>
</compile_context>

<pallas_src>
import math

import jax
import jax.numpy as jnp
from jax.experimental import pallas as pl
from jax.experimental.pallas import tpu as pltpu

_INV_SQRT2 = 0.7071067811865476
_EPS = 1e-5  # nn.LayerNorm default


def _round_up(x, m):
    return ((x + m - 1) // m) * m


def _cdiv(a, b):
    return -(-a // b)


def _vmem_need(rt, C, tk, x_bytes, out_bytes):
    """Rough VMEM footprint (bytes) for one pallas_call configuration."""
    wbuf = 1 if tk == C else 2          # weights single-buffered when fully resident
    return (2 * rt * C * x_bytes        # x tile (double-buffered, native dtype)
            + 2 * rt * C * out_bytes    # out tile (double-buffered)
            + rt * C * 2                # bf16 LayerNorm cache (scratch)
            + rt * C * 4                # f32 accumulator (scratch)
            + wbuf * 2 * C * tk * 2     # W1 + W2 blocks (bf16)
            + rt * tk * 4               # hidden intermediate
            + 8 * C * 4)                # gamma/beta/b1/b2 + slack


def _plan_tiling(rows, C, x_bytes, out_bytes, row_tile, vmem_budget):
    """Pick (row_tile, hidden_tile) for the given VMEM budget."""

    def clamp_rt(r):
        r = min(r, _round_up(rows, 8))
        return max(8, _round_up(r, 8))

    rt = clamp_rt(row_tile)
    # Prefer >= 2 row tiles so both v7x TensorCores get work on small inputs.
    if rows > 8 and _cdiv(rows, rt) < 2:
        rt = clamp_rt((rows + 1) // 2)

    # 1) Preferred regime: full weight residency (tk = C, nk = 1) -> W1/W2 are
    #    read from HBM exactly once per call.
    if _vmem_need(rt, C, C, x_bytes, out_bytes) <= vmem_budget:
        return rt, C

    # 2) K-tiled fallback: weights are re-streamed once per row tile, so grow
    #    the row tile toward 512 rows first (arithmetic intensity ~= rt
    #    flops/byte must clear the HBM roofline ridge), then shrink tk.
    tk_cands = [t for t in range((C // 128) * 128, 127, -128) if C % t == 0]
    if not tk_cands:
        tk_cands = [C]                  # C has no multiple-of-128 divisor
    r = clamp_rt(max(row_tile, 512))
    while True:
        for t in tk_cands:
            if _vmem_need(r, C, t, x_bytes, out_bytes) <= vmem_budget:
                return r, t
        if r <= 8:
            return 8, tk_cands[-1]      # nothing fits comfortably; best effort
        r = max(8, _round_up(r // 2, 8))


def _resblock_kernel(x_ref, g_ref, beta_ref, w1_ref, b1_ref, w2_ref, b2_ref,
                     o_ref, xn_bf_ref, acc_ref):
    k = pl.program_id(1)
    nk = pl.num_programs(1)

    # Once per row tile (k == 0): LayerNorm in f32; cache the bf16 MXU feed and
    # fold the residual + output bias into the f32 accumulator.
    @pl.when(k == 0)
    def _():
        x = x_ref[...].astype(jnp.float32)
        mean = jnp.mean(x, axis=-1, keepdims=True)
        centered = x - mean
        var = jnp.mean(centered * centered, axis=-1, keepdims=True)
        xn = centered * jax.lax.rsqrt(var + _EPS)
        xn = xn * g_ref[...] + beta_ref[...]
        xn_bf_ref[...] = xn.astype(jnp.bfloat16)
        acc_ref[...] = xn + b2_ref[...]            # residual + b2 folded in

    # Linear 1 on hidden chunk k: bf16 MXU feed, f32 accumulation.
    h = jnp.dot(xn_bf_ref[...], w1_ref[...], preferred_element_type=jnp.float32)
    h = h + b1_ref[...]
    # Exact GELU (PyTorch nn.GELU default, erf form); multiply, no divide.
    h = 0.5 * h * (1.0 + jax.lax.erf(h * _INV_SQRT2))
    # Linear 2: accumulate the partial product for this hidden chunk.
    acc_ref[...] += jnp.dot(h.astype(jnp.bfloat16), w2_ref[...],
                            preferred_element_type=jnp.float32)

    # Finalize: accumulator already holds xn + b2 + full matmul contribution.
    @pl.when(k == nk - 1)
    def _():
        o_ref[...] = acc_ref[...].astype(o_ref.dtype)


def simple_res_block(x, gamma, beta, w1, b1, w2, b2, *,
                     row_tile=256, tk_override=None):
    """x: (B, S, C). Weights use the PyTorch nn.Linear convention:
    w1, w2 are (out, in); b1, b2, gamma, beta are (C,)."""
    B, S, C = x.shape
    rows = B * S
    x_bytes = jnp.dtype(x.dtype).itemsize
    out_bytes = x_bytes

    # Generation-aware VMEM budget (never exceed physical capacity; leave
    # headroom for compiler scratch).  Falls back to the smallest (v7x) VMEM.
    try:
        vmem_cap = int(pltpu.get_tpu_info().vmem_capacity_bytes)
    except Exception:
        vmem_cap = 64 * 1024 * 1024
    vmem_budget = (vmem_cap * 85) // 100

    rt, tk = _plan_tiling(rows, C, x_bytes, out_bytes, row_tile, vmem_budget)
    if tk_override is not None:
        if C % tk_override != 0:
            raise ValueError("tk_override must divide the channel dimension")
        tk = tk_override
    nk = C // tk
    need = _vmem_need(rt, C, tk, x_bytes, out_bytes)

    rows_p = _round_up(rows, rt)
    n_row_tiles = rows_p // rt

    # Keep x in its native dtype (no wrapper upcast); pad rows to the tile.
    x2d = x.reshape(rows, C)
    if rows_p != rows:
        x2d = jnp.pad(x2d, ((0, rows_p - rows), (0, 0)))

    # One-time weight prep: transpose to (in, out) and cast to bf16.
    w1_t = w1.T.astype(jnp.bfloat16)   # (C_in, C_hidden)
    w2_t = w2.T.astype(jnp.bfloat16)   # (C_hidden, C_out)
    g2 = gamma.reshape(1, C).astype(jnp.float32)
    be2 = beta.reshape(1, C).astype(jnp.float32)
    b1_2 = b1.reshape(1, C).astype(jnp.float32)
    b2_2 = b2.reshape(1, C).astype(jnp.float32)

    vmem_limit = int(min(max(need * 5 // 4, 4 * 1024 * 1024), vmem_budget))

    # Honest scheduling hint: weight bytes scale with the number of row tiles
    # only when K-tiling forces re-streaming.
    weight_bytes = 2 * C * C * 2
    cost = pl.CostEstimate(
        flops=4 * rows_p * C * C,
        transcendentals=rows_p * C,
        bytes_accessed=(rows_p * C * (x_bytes + out_bytes)
                        + weight_bytes * (1 if nk == 1 else n_row_tiles)
                        + 6 * C * 4),
    )

    const1 = pl.Buffered(1)                  # constant block index -> 1 buffer
    w_mode = const1 if nk == 1 else None     # weights resident when nk == 1

    out = pl.pallas_call(
        _resblock_kernel,
        out_shape=jax.ShapeDtypeStruct((rows_p, C), x.dtype),
        grid_spec=pltpu.PrefetchScalarGridSpec(
            num_scalar_prefetch=0,
            grid=(n_row_tiles, nk),
            in_specs=[
                pl.BlockSpec((rt, C), lambda i, k: (i, 0)),                        # x tile
                pl.BlockSpec((1, C), lambda i, k: (0, 0), pipeline_mode=const1),   # gamma
                pl.BlockSpec((1, C), lambda i, k: (0, 0), pipeline_mode=const1),   # beta
                pl.BlockSpec((C, tk), lambda i, k: (0, k), pipeline_mode=w_mode),  # W1
                pl.BlockSpec((1, tk), lambda i, k: (0, k), pipeline_mode=w_mode),  # b1
                pl.BlockSpec((tk, C), lambda i, k: (k, 0), pipeline_mode=w_mode),  # W2
                pl.BlockSpec((1, C), lambda i, k: (0, 0), pipeline_mode=const1),   # b2
            ],
            out_specs=pl.BlockSpec((rt, C), lambda i, k: (i, 0)),
            scratch_shapes=[
                pltpu.VMEM((rt, C), jnp.bfloat16),   # cached bf16 LayerNorm output
                pltpu.VMEM((rt, C), jnp.float32),    # f32 accumulator (xn + b2 folded in)
            ],
        ),
        compiler_params=pltpu.CompilerParams(
            dimension_semantics=("parallel", "arbitrary"),
            vmem_limit_bytes=vmem_limit,
        ),
        cost_estimate=cost,
    )(x2d, g2, be2, w1_t, b1_2, w2_t, b2_2)

    return out[:rows].reshape(B, S, C)


def _reference(x, gamma, beta, w1, b1, w2, b2):
    # Pure-JAX f32 reference matching PyTorch semantics exactly.
    mean = jnp.mean(x, axis=-1, keepdims=True)
    var = jnp.mean((x - mean) ** 2, axis=-1, keepdims=True)
    xn = (x - mean) / jnp.sqrt(var + _EPS) * gamma + beta
    h = xn @ w1.T + b1
    h = 0.5 * h * (1.0 + jax.lax.erf(h * _INV_SQRT2))
    y = h @ w2.T + b2
    return xn + y


if __name__ == "__main__":
    # Small shapes: exercises row padding (18 -> 32), >=2 row tiles, the
    # weight-resident path (default plan) AND the K-tiled accumulator path
    # (forced tk=128 -> 2 K steps).
    B, S, C = 2, 9, 256
    key = jax.random.PRNGKey(0)
    kx, kw1, kb1, kw2, kb2, kg, kb = jax.random.split(key, 7)

    x = jax.random.normal(kx, (B, S, C), dtype=jnp.float32)

    gamma = 1.0 + 0.1 * jax.random.normal(kg, (C,), dtype=jnp.float32)
    beta = 0.1 * jax.random.normal(kb, (C,), dtype=jnp.float32)
    w1 = jax.random.normal(kw1, (C, C), dtype=jnp.float32) / math.sqrt(C)
    b1 = 0.05 * jax.random.normal(kb1, (C,), dtype=jnp.float32)
    w2 = jax.random.normal(kw2, (C, C), dtype=jnp.float32) / math.sqrt(C)
    b2 = 0.05 * jax.random.normal(kb2, (C,), dtype=jnp.float32)

    ref = _reference(x, gamma, beta, w1, b1, w2, b2)

    # Run 1: default plan (full weight residency, nk == 1, Buffered(1) weights).
    out1 = jax.block_until_ready(simple_res_block(x, gamma, beta, w1, b1, w2, b2))
    err1 = float(jnp.max(jnp.abs(out1 - ref)))
    assert jnp.allclose(out1, ref, atol=5e-2, rtol=5e-2), err1

    # Run 2: force hidden-dim K-tiling (nk == 2) to exercise the accumulator path.
    out2 = jax.block_until_ready(
        simple_res_block(x, gamma, beta, w1, b1, w2, b2, row_tile=16, tk_override=128))
    err2 = float(jnp.max(jnp.abs(out2 - ref)))
    assert jnp.allclose(out2, ref, atol=5e-2, rtol=5e-2), err2

    print("KERNEL_OK")
</pallas_src>

<mosaic_0001>
module attributes {stable_mosaic.version = 11 : i64} {
  func.func @_resblock_kernel(%arg0: i32, %arg1: i32, %arg2: memref<16x256xf32, #tpu.memory_space<vmem>>, %arg3: memref<1x256xf32, #tpu.memory_space<vmem>>, %arg4: memref<1x256xf32, #tpu.memory_space<vmem>>, %arg5: memref<256x256xbf16, #tpu.memory_space<vmem>>, %arg6: memref<1x256xf32, #tpu.memory_space<vmem>>, %arg7: memref<256x256xbf16, #tpu.memory_space<vmem>>, %arg8: memref<1x256xf32, #tpu.memory_space<vmem>>, %arg9: memref<16x256xf32, #tpu.memory_space<vmem>>, %arg10: memref<16x256xbf16, #tpu.memory_space<vmem>>, %arg11: memref<16x256xf32, #tpu.memory_space<vmem>>) attributes {dimension_semantics = [#tpu.dimension_semantics<parallel>, #tpu.dimension_semantics<arbitrary>], iteration_bounds = array<i64: 2, 1>, scalar_prefetch = 0 : i64, scratch_operands = 2 : i64, tpu.core_type = #tpu.core_type<tc>, window_params = [{transform_indices = @transform_0, window_bounds = array<i64: 16, 256>}, {pipeline_mode = #tpu.pipeline_mode<synchronous>, transform_indices = @transform_1, window_bounds = array<i64: 1, 256>}, {pipeline_mode = #tpu.pipeline_mode<synchronous>, transform_indices = @transform_2, window_bounds = array<i64: 1, 256>}, {pipeline_mode = #tpu.pipeline_mode<synchronous>, transform_indices = @transform_3, window_bounds = array<i64: 256, 256>}, {pipeline_mode = #tpu.pipeline_mode<synchronous>, transform_indices = @transform_4, window_bounds = array<i64: 1, 256>}, {pipeline_mode = #tpu.pipeline_mode<synchronous>, transform_indices = @transform_5, window_bounds = array<i64: 256, 256>}, {pipeline_mode = #tpu.pipeline_mode<synchronous>, transform_indices = @transform_6, window_bounds = array<i64: 1, 256>}, {transform_indices = @transform_7, window_bounds = array<i64: 16, 256>}]} {
    %c0_i32 = arith.constant 0 : i32
    %0 = arith.cmpi eq, %arg1, %c0_i32 : i32
    %1 = arith.extui %0 : i1 to i32
    %c0_i32_0 = arith.constant 0 : i32
    %2 = arith.cmpi ne, %1, %c0_i32_0 : i32
    scf.if %2 {
      %c0_18 = arith.constant 0 : index
      %c0_19 = arith.constant 0 : index
      %26 = vector.load %arg2[%c0_18, %c0_19] : memref<16x256xf32, #tpu.memory_space<vmem>>, vector<16x256xf32>
      %cst_20 = arith.constant dense<0.000000e+00> : vector<16xf32>
      %27 = vector.multi_reduction <add>, %26, %cst_20 [1] : vector<16x256xf32> to vector<16xf32>
      %28 = vector.shape_cast %27 : vector<16xf32> to vector<16x1xf32>
      %cst_21 = arith.constant 2.560000e+02 : f32
      %29 = vector.broadcast %cst_21 : f32 to vector<16x1xf32>
      %30 = arith.divf %28, %29 : vector<16x1xf32>
      %31 = vector.broadcast %30 : vector<16x1xf32> to vector<16x256xf32>
      %32 = arith.subf %26, %31 : vector<16x256xf32>
      %33 = arith.mulf %32, %32 : vector<16x256xf32>
      %cst_22 = arith.constant dense<0.000000e+00> : vector<16xf32>
      %34 = vector.multi_reduction <add>, %33, %cst_22 [1] : vector<16x256xf32> to vector<16xf32>
      %35 = vector.shape_cast %34 : vector<16xf32> to vector<16x1xf32>
      %cst_23 = arith.constant 2.560000e+02 : f32
      %36 = vector.broadcast %cst_23 : f32 to vector<16x1xf32>
      %37 = arith.divf %35, %36 : vector<16x1xf32>
      %cst_24 = arith.constant 9.99999974E-6 : f32
      %38 = vector.broadcast %cst_24 : f32 to vector<16x1xf32>
      %39 = arith.addf %37, %38 : vector<16x1xf32>
      %40 = math.rsqrt %39 : vector<16x1xf32>
      %41 = vector.broadcast %40 : vector<16x1xf32> to vector<16x256xf32>
      %42 = arith.mulf %32, %41 : vector<16x256xf32>
      %c0_25 = arith.constant 0 : index
      %c0_26 = arith.constant 0 : index
      %43 = vector.load %arg3[%c0_25, %c0_26] : memref<1x256xf32, #tpu.memory_space<vmem>>, vector<1x256xf32>
      %44 = vector.broadcast %43 : vector<1x256xf32> to vector<16x256xf32>
      %45 = arith.mulf %42, %44 : vector<16x256xf32>
      %c0_27 = arith.constant 0 : index
      %c0_28 = arith.constant 0 : index
      %46 = vector.load %arg4[%c0_27, %c0_28] : memref<1x256xf32, #tpu.memory_space<vmem>>, vector<1x256xf32>
      %47 = vector.broadcast %46 : vector<1x256xf32> to vector<16x256xf32>
      %48 = arith.addf %45, %47 : vector<16x256xf32>
      %49 = arith.truncf %48 : vector<16x256xf32> to vector<16x256xbf16>
      %c0_29 = arith.constant 0 : index
      %c0_30 = arith.constant 0 : index
      %50 = vector.load %arg10[%c0_29, %c0_30] : memref<16x256xbf16, #tpu.memory_space<vmem>>, vector<16x256xbf16>
      tpu.vector_store %arg10[%c0_29, %c0_30], %49 {strides = array<i32>} : memref<16x256xbf16, #tpu.memory_space<vmem>>, vector<16x256xbf16>,
      %c0_31 = arith.constant 0 : index
      %c0_32 = arith.constant 0 : index
      %51 = vector.load %arg8[%c0_31, %c0_32] : memref<1x256xf32, #tpu.memory_space<vmem>>, vector<1x256xf32>
      %52 = vector.broadcast %51 : vector<1x256xf32> to vector<16x256xf32>
      %53 = arith.addf %48, %52 : vector<16x256xf32>
      %c0_33 = arith.constant 0 : index
      %c0_34 = arith.constant 0 : index
      %54 = vector.load %arg11[%c0_33, %c0_34] : memref<16x256xf32, #tpu.memory_space<vmem>>, vector<16x256xf32>
      tpu.vector_store %arg11[%c0_33, %c0_34], %53 {strides = array<i32>} : memref<16x256xf32, #tpu.memory_space<vmem>>, vector<16x256xf32>,
    } else {
    }
    %c0 = arith.constant 0 : index
    %c0_1 = arith.constant 0 : index
    %3 = vector.load %arg10[%c0, %c0_1] : memref<16x256xbf16, #tpu.memory_space<vmem>>, vector<16x256xbf16>
    %c0_2 = arith.constant 0 : index
    %c0_3 = arith.constant 0 : index
    %4 = vector.load %arg5[%c0_2, %c0_3] : memref<256x256xbf16, #tpu.memory_space<vmem>>, vector<256x256xbf16>
    %cst = arith.constant dense<0.000000e+00> : vector<16x256xf32>
    %5 = tpu.matmul %3, %4, %cst {dimension_numbers = #tpu.dot_dimension_numbers<[1], [0], [0], [1], [0, 0, 1, 1], [], []>} : vector<16x256xbf16>, vector<256x256xbf16>, vector<16x256xf32> -> vector<16x256xf32>
    %c0_4 = arith.constant 0 : index
    %c0_5 = arith.constant 0 : index
    %6 = vector.load %arg6[%c0_4, %c0_5] : memref<1x256xf32, #tpu.memory_space<vmem>>, vector<1x256xf32>
    %7 = vector.broadcast %6 : vector<1x256xf32> to vector<16x256xf32>
    %8 = arith.addf %5, %7 : vector<16x256xf32>
    %cst_6 = arith.constant 5.000000e-01 : f32
    %9 = vector.broadcast %cst_6 : f32 to vector<16x256xf32>
    %10 = arith.mulf %9, %8 : vector<16x256xf32>
    %cst_7 = arith.constant 0.707106769 : f32
    %11 = vector.broadcast %cst_7 : f32 to vector<16x256xf32>
    %12 = arith.mulf %8, %11 : vector<16x256xf32>
    %13 = math.erf %12 : vector<16x256xf32>
    %cst_8 = arith.constant 1.000000e+00 : f32
    %14 = vector.broadcast %cst_8 : f32 to vector<16x256xf32>
    %15 = arith.addf %14, %13 : vector<16x256xf32>
    %16 = arith.mulf %10, %15 : vector<16x256xf32>
    %c0_9 = arith.constant 0 : index
    %c0_10 = arith.constant 0 : index
    %17 = vector.load %arg11[%c0_9, %c0_10] : memref<16x256xf32, #tpu.memory_space<vmem>>, vector<16x256xf32>
    %18 = arith.truncf %16 : vector<16x256xf32> to vector<16x256xbf16>
    %c0_11 = arith.constant 0 : index
    %c0_12 = arith.constant 0 : index
    %19 = vector.load %arg7[%c0_11, %c0_12] : memref<256x256xbf16, #tpu.memory_space<vmem>>, vector<256x256xbf16>
    %cst_13 = arith.constant dense<0.000000e+00> : vector<16x256xf32>
    %20 = tpu.matmul %18, %19, %cst_13 {dimension_numbers = #tpu.dot_dimension_numbers<[1], [0], [0], [1], [0, 0, 1, 1], [], []>} : vector<16x256xbf16>, vector<256x256xbf16>, vector<16x256xf32> -> vector<16x256xf32>
    %21 = arith.addf %17, %20 : vector<16x256xf32>
    %c0_14 = arith.constant 0 : index
    %c0_15 = arith.constant 0 : index
    %22 = vector.load %arg11[%c0_14, %c0_15] : memref<16x256xf32, #tpu.memory_space<vmem>>, vector<16x256xf32>
    tpu.vector_store %arg11[%c0_14, %c0_15], %21 {strides = array<i32>} : memref<16x256xf32, #tpu.memory_space<vmem>>, vector<16x256xf32>,
    %c0_i32_16 = arith.constant 0 : i32
    %23 = arith.cmpi eq, %arg1, %c0_i32_16 : i32
    %24 = arith.extui %23 : i1 to i32
    %c0_i32_17 = arith.constant 0 : i32
    %25 = arith.cmpi ne, %24, %c0_i32_17 : i32
    scf.if %25 {
      %c0_18 = arith.constant 0 : index
      %c0_19 = arith.constant 0 : index
      %26 = vector.load %arg11[%c0_18, %c0_19] : memref<16x256xf32, #tpu.memory_space<vmem>>, vector<16x256xf32>
      %c0_20 = arith.constant 0 : index
      %c0_21 = arith.constant 0 : index
      %27 = vector.load %arg9[%c0_20, %c0_21] : memref<16x256xf32, #tpu.memory_space<vmem>>, vector<16x256xf32>
      tpu.vector_store %arg9[%c0_20, %c0_21], %26 {strides = array<i32>} : memref<16x256xf32, #tpu.memory_space<vmem>>, vector<16x256xf32>,
    } else {
    }
    return
  }
  func.func @transform_0(%arg0: i32, %arg1: i32) -> (i32, i32) {
    %c0_i32 = arith.constant 0 : i32
    %c0_i32_0 = arith.constant 0 : i32
    return %arg0, %c0_i32 : i32, i32
  }
  func.func @transform_1(%arg0: i32, %arg1: i32) -> (i32, i32) {
    %c0_i32 = arith.constant 0 : i32
    %c0_i32_0 = arith.constant 0 : i32
    %c0_i32_1 = arith.constant 0 : i32
    return %c0_i32, %c0_i32_0 : i32, i32
  }
  func.func @transform_2(%arg0: i32, %arg1: i32) -> (i32, i32) {
    %c0_i32 = arith.constant 0 : i32
    %c0_i32_0 = arith.constant 0 : i32
    %c0_i32_1 = arith.constant 0 : i32
    return %c0_i32, %c0_i32_0 : i32, i32
  }
  func.func @transform_3(%arg0: i32, %arg1: i32) -> (i32, i32) {
    %c0_i32 = arith.constant 0 : i32
    %c0_i32_0 = arith.constant 0 : i32
    return %c0_i32, %arg1 : i32, i32
  }
  func.func @transform_4(%arg0: i32, %arg1: i32) -> (i32, i32) {
    %c0_i32 = arith.constant 0 : i32
    %c0_i32_0 = arith.constant 0 : i32
    return %c0_i32, %arg1 : i32, i32
  }
  func.func @transform_5(%arg0: i32, %arg1: i32) -> (i32, i32) {
    %c0_i32 = arith.constant 0 : i32
    %c0_i32_0 = arith.constant 0 : i32
    return %arg1, %c0_i32 : i32, i32
  }
  func.func @transform_6(%arg0: i32, %arg1: i32) -> (i32, i32) {
    %c0_i32 = arith.constant 0 : i32
    %c0_i32_0 = arith.constant 0 : i32
    %c0_i32_1 = arith.constant 0 : i32
    return %c0_i32, %c0_i32_0 : i32, i32
  }
  func.func @transform_7(%arg0: i32, %arg1: i32) -> (i32, i32) {
    %c0_i32 = arith.constant 0 : i32
    %c0_i32_0 = arith.constant 0 : i32
    return %arg0, %c0_i32 : i32, i32
  }
}

</mosaic_0001>

<bundles_post_ra>
// kernel: tpu_custom_call.1
= control target key start
LH: loop header
LB: loop body
LE: loop exit
PB: predicated region body
PF: predicated region fallthrough
CT: control target
= control target key end

     0   :  { %12 = vsyncpa [#allocation5], 0  ;;  %s1962_s0 = inlined_call_operand.hbm [shape: f32[32,256], index: 0, kind: input, shape index: {}]   ;;  %s1963_s1 = inlined_call_operand.vmem [shape: f32[1,256], index: 1, kind: input, shape index: {}]   ;;  %s1964_s2 = inlined_call_operand.vmem [shape: f32[1,256], index: 2, kind: input, shape index: {}]   ;;  %s1965_s3 = inlined_call_operand.hbm [shape: bf16[256,256], index: 3, kind: input, shape index: {}]   ;;  %s1966_s4 = inlined_call_operand.vmem [shape: f32[1,256], index: 4, kind: input, shape index: {}]   ;;  %s1967_s5 = inlined_call_operand.hbm [shape: bf16[256,256], index: 5, kind: input, shape index: {}]   ;;  %s1968_s6 = inlined_call_operand.vmem [shape: f32[1,256], index: 6, kind: input, shape index: {}]   ;;  %s1969_s7 = inlined_call_operand.hbm [shape: f32[32,256], index: 7, kind: output, shape index: {}]  }
   0x1   :  { %14 = vsyncpa [#allocation5 + $0x1], 0 }
   0x2   :  { %15 = vsyncpa [#allocation8], 0 }
   0x3   :  { %16 = vsyncpa [#allocation6], 0 }
   0x4   :  { %18 = vsyncpa [#allocation6 + $0x1], 0  ;;  %s1647_s24 = smov 0   ;;  %s1649_s25 = smov 0  }
   0x5   :  { %s1651_s26 = smov 0   ;;  %s1653_s27 = smov 0  }
   0x6   :  { %s1655_s28 = smov 0   ;;  %s1657_s29 = smov 0  }
   0x7 LB: > { %1976 = sst [smem:[#allocation14_spill]] %s1575_s24  ;;  %s1136_s30 = sadd.s32 4294967295, %s1595_s29   ;;  %s1595_s29 = sphi %s1657_s29, %s24_s29   ;;  %s1591_s28 = sphi %s1655_s28, %s1997_s28   ;;  %s1587_s27 = sphi %s1653_s27, %s1996_s27   ;;  %s1583_s26 = sphi %s1651_s26, %s1995_s26   ;;  %s1579_s25 = sphi %s1649_s25, %s1994_s25   ;;  %s1575_s24 = sphi %s1647_s24, %s1993_s24  }
   0x8   : > { %s1137_s8 = sadd.s32 4294967294, %s1595_s29   ;;  %p56_p0 = scmp.ne.s32.totalorder %s1579_s25, %s1575_s24 }
   0x9   : > { %p1681_p1 = scmp.eq.s32.totalorder %s1136_s30, 0  ;;  %p1685_p2 = scmp.eq.s32.totalorder %s1136_s30, 1 }
   0xa   : > { %p227_p3 = scmp.eq.s32.totalorder %s1137_s8, 1  ;;  %p1138_p5 = scmp.ge.s32.totalorder %s1595_s29, 1 }
   0xb   : > { %s1977_s9 = scalar_select %p1681_p1, 1, 0 }
   0xc   : > { %p1691_p4 = por %p1681_p1, %p56_p0  ;;  %p1696_p6 = por %p227_p3, %p56_p0 }
   0xd   : > { %p234_p7 = scmp.lt.s32.totalorder %s1595_s29, 3  ;;  %s1597_s14 = smov [#allocation7]  }
   0xe   : > { %s1979_s11 = scalar_select %p1691_p4, 1, 0 }
   0xf   : > { %s1980_s12 = scalar_select %p1696_p6, 1, 0 }
  0x10   : > { %p1701_p8 = pnand %p1138_p5, %p234_p7  ;;  %s255_s15 = sshll.u32 %s1597_s14, 4  ;;  %s1705_s15 = int_to_ptr.vmem [resolvable:$true] %s255_s15 }
  0x11   : > { %1981 = sst [smem:[#allocation15_spill]] %s1980_s12  ;;  %s1598_s17 = smov [#allocation9]  }
  0x12   : > { %p1238_p9 = pneg %p1701_p8  ;;  %s280_s18 = sshll.u32 %s1598_s17, 4  ;;  %s1716_s18 = int_to_ptr.vmem [resolvable:$true] %s280_s18 }
  0x13   : > { %s1423_s21 = scalar_lea.hbm %s1965_s3, 4096 }
  0x14   : > { %p1712_p11 = pnand %p1238_p9, %p1681_p1  ;;  %p1424_p12 = scmp.ne.s32.totalorder %s1965_s3, %s1423_s21 }
  0x15   : > { %p1430_p5 = scmp.lt.u32.totalorder %s1423_s21, %s1965_s3 }
  0x16   : > { %p1425_p13 = pneg %p1712_p11 }
  0x18   : > { %p1426_p0 = pnand %p1425_p13, %p1424_p12 }
  0x1a   : > { %p1427_p3 = pneg %p1426_p0 }
  0x1c   : > { %p1432_p7 = pnand %p1430_p5, %p1427_p3 }
  0x1e   : > { %1435 = shalt.err (!%p1432_p7)
}
  0x1f   : > { %s1436_s14 = scalar_lea.vmem %s1705_s15, 4096  ;;  %p1444_p1 = scmp.lt.s32.totalorder %s1705_s15, %s1705_s15 }
  0x20   : > { %p1437_p9 = scmp.ne.s32.totalorder %s1705_s15, %s1436_s14  ;;  %p1445_p12 = scmp.lt.s32.totalorder %s1436_s14, %s1436_s14 }
  0x22   : > { %p1439_p10 = pnand %p1437_p9, %p1425_p13  ;;  %p1446_p0 = por %p1445_p12, %p1444_p1 }
  0x24   : > { %p1440_p6 = pneg %p1439_p10 }
  0x26   : > { %p1447_p4 = pnand %p1446_p0, %p1440_p6 }
  0x28   : > { %1450 = shalt.err (!%p1447_p4)
}
  0x29   : > { %s1599_s17 = smov 128   ;;  %s1600_s19 = smov 8  }
  0x2a   : > { %1241 = dma.hbm_to_vmem [thread:$0]  (!%p1712_p11), %s1965_s3, 4096, %s1705_s15, [#allocation8], %s1599_s17, %s1599_s17, %s1600_s19  }
  0x2b   : > { %s1451_s30 = scalar_lea.hbm %s1967_s5, 4096 }
  0x2c   : > { %p1452_p1 = scmp.ne.s32.totalorder %s1967_s5, %s1451_s30  ;;  %p1458_p10 = scmp.lt.u32.totalorder %s1451_s30, %s1967_s5 }
  0x2e   : > { %p1454_p4 = pnand %p1452_p1, %p1425_p13 }
  0x30   : > { %p1455_p6 = pneg %p1454_p4 }
  0x32   : > { %p1460_p3 = pnand %p1458_p10, %p1455_p6 }
  0x34   : > { %1463 = shalt.err (!%p1460_p3)
}
  0x35   : > { %s1464_s15 = scalar_lea.vmem %s1716_s18, 4096  ;;  %p1472_p12 = scmp.lt.s32.totalorder %s1716_s18, %s1716_s18 }
  0x36   : > { %p1465_p5 = scmp.ne.s32.totalorder %s1716_s18, %s1464_s15  ;;  %p1473_p0 = scmp.lt.s32.totalorder %s1464_s15, %s1464_s15 }
  0x38   : > { %p1467_p7 = pnand %p1465_p5, %p1425_p13  ;;  %p1474_p1 = por %p1473_p0, %p1472_p12 }
  0x3a   : > { %p1468_p9 = pneg %p1467_p7 }
  0x3c   : > { %p1475_p4 = pnand %p1474_p1, %p1468_p9 }
  0x3e   : > { %1478 = shalt.err (!%p1475_p4)
}
  0x3f   : > { %1244 = dma.hbm_to_vmem [thread:$0]  (!%p1712_p11), %s1967_s5, 4096, %s1716_s18, [#allocation8], %s1599_s17, %s1599_s17, %s1600_s19  }
  0x40   : > { %s36_s20 = sadd.s32 1, %s1591_s28  ;;  %s43_s21 = sadd.s32 1, %s1583_s26 }
  0x41   : > { %p38_p13 = scmp.ge.s32.totalorder %s36_s20, 2  ;;  %p50_p6 = scmp.ne.s32.totalorder %s1583_s26, %s1579_s25 }
  0x42   : > { %p51_p10 = scmp.eq.s32.totalorder %s1595_s29, 0  ;;  %p1255_p3 = scmp.lt.s32.totalorder %s1595_s29, 2 }
  0x43   : > { %s1999_s20 = smov (%p38_p13, %s36_s20), 0  ;;  %p1780_p7 = por %p1685_p2, %p50_p6 }
  0x44   : > { %p52_p5 = por %p51_p10, %p50_p6  ;;  %s40_s22 = ssub.s32 %s1591_s28, %s1999_s20 }
  0x45   : > { %s1984_s16 = scalar_select %p1780_p7, 1, 0 }
  0x46   : > { %s297_s23 = sand.u32 1, %s1583_s26   ;;  %p41_p9 = scmp.eq.s32.totalorder %s40_s22, 0 }
  0x47   : > { %s1143_s18 = sshll.u32 %s297_s23, 5  ;;  %s1223_s17 = sshll.u32 %s1591_s28, 9 }
  0x48   : > { %s1789_s19 = scalar_select %p41_p9, %s1583_s26, %s43_s21  }
  0x49   : > { %s1794_s14 = scalar_lea.hbm %s1962_s0, %s1223_s17  ;;  %s301_s10 = scalar_lea.vmem [#allocation4], %s1143_s18 }
  0x4a   : > { %s309_s15 = sshll.u32 %s301_s10, 4  ;;  %p1798_p2 = pnand %p1255_p3, %p52_p5  ;;  %s1802_s15 = int_to_ptr.vmem [resolvable:$true] %s309_s15 }
  0x4b   : > { %s1804_s12 = scalar_lea.sflag [#allocation5], %s297_s23  ;;  %s1479_s21 = scalar_lea.hbm %s1794_s14, 512 }
  0x4c   : > { %p1480_p11 = scmp.ne.s32.totalorder %s1794_s14, %s1479_s21  ;;  %p1481_p12 = pneg %p1798_p2 }
  0x4d   : > { %s1484_s17 = scalar_lea.hbm %s1962_s0, 1024  ;;  %p1485_p4 = scmp.lt.u32.totalorder %s1794_s14, %s1962_s0 }
  0x4e   : > { %p1482_p0 = pnand %p1481_p12, %p1480_p11  ;;  %p1486_p13 = scmp.lt.u32.totalorder %s1484_s17, %s1479_s21 }
  0x4f   : > { %p1488_p10 = scmp.lt.u32.totalorder %s1479_s21, %s1794_s14 }
  0x50   : > { %p1483_p1 = pneg %p1482_p0  ;;  %p1487_p6 = por %p1486_p13, %p1485_p4 }
  0x52   : > { %p1489_p3 = por %p1488_p10, %p1487_p6 }
  0x54   : > { %p1490_p5 = pnand %p1489_p3, %p1483_p1 }
  0x56   : > { %1493 = shalt.err (!%p1490_p5)
}
  0x57   : > { %s1494_s23 = scalar_lea.vmem %s1802_s15, 512  ;;  %s1601_s10 = smov [#allocation4]  }
  0x58   : > { %p1495_p9 = scmp.ne.s32.totalorder %s1802_s15, %s1494_s23  ;;  %s1499_s22 = sshll.u32 %s1601_s10, 4  ;;  %s1500_s22 = int_to_ptr.vmem [resolvable:$false] %s1499_s22 }
  0x59   : > { %s1501_s18 = scalar_lea.vmem %s1500_s22, 1024  ;;  %p1502_p7 = scmp.lt.s32.totalorder %s1802_s15, %s1500_s22 }
  0x5a   : > { %p1497_p11 = pnand %p1495_p9, %p1481_p12  ;;  %p1503_p4 = scmp.lt.s32.totalorder %s1501_s18, %s1494_s23 }
  0x5c   : > { %p1498_p0 = pneg %p1497_p11  ;;  %p1504_p13 = por %p1503_p4, %p1502_p7 }
  0x5e   : > { %p1505_p6 = pnand %p1504_p13, %p1498_p0 }
  0x60   : > { %1508 = shalt.err (!%p1505_p6)
}
  0x61   : > { %s1602_s21 = smov 256   ;;  %s1603_s17 = smov 16  }
  0x62   : > { %1248 = dma.hbm_to_vmem [thread:$0]  (!%p1798_p2), %s1794_s14, 512, %s1802_s15, %s1804_s12, %s1602_s21, %s1602_s21, %s1603_s17  }
  0x63   : > { %321 = sbr.rel (%p1701_p8) target bundleno = 902 (0x386), region = 48  ;;  %s1835_s30 = sand.u32 (!%p1701_p8), 1, %s1579_s25  }
  0x64   : > { %s1148_s8 = sshll.u32 (!%p1701_p8), %s1835_s30, 5  ;;  %s324_s23 = scalar_lea.sflag (!%p1701_p8), [#allocation5], %s1835_s30 }
  0x65   : > { %s327_s10 = scalar_lea.vmem (!%p1701_p8), [#allocation4], %s1148_s8  ;;  %p1986_p7 = scmp.ne.s32.totalorder (!%p1701_p8), %s1979_s11, 0 }
  0x6a   : > { %1562 = dma.done.wait (%p1986_p7), %s324_s23, 512  }
  0x6b   : > { %1564 = vsyncadd (%p1986_p7), %s324_s23, 4294966784  ;;  %p1987_p2 = scmp.ne.s32.totalorder %s1977_s9, 0 }
  0x6d   : > { %1566 = dma.done.wait (%p1987_p2), [#allocation8], 8192  }
  0x6e   : > { %1568 = vsyncadd (%p1987_p2), [#allocation8], 4294959104  ;;  %v383_v0 = vld [vmem:[%s327_s10] sm:$0xff]  ;;  %v384_v1 = vld [vmem:[%s327_s10 + $0x8] sm:$0xff]  ;;  %s369_s18 = scalar_lea.vmem [#allocation10], %s1148_s8  ;;  %s1225_s17 = sshll.u32 %s1587_s27, 9 }
  0x6f   : > { %v385_v2 = vld [vmem:[%s327_s10 + $0x10] sm:$0xff]  ;;  %v387_v3 = vadd.f32 %v384_v1, %v383_v0  ;;  %v386_v4 = vld [vmem:[%s327_s10 + $0x18] sm:$0xff]  ;;  %v1315_v6 = vld [vmem:[#allocation7 + $0x4] ss:$8 sps:$4 sm:$0xff]   ;;  %s1020_s21 = sshll.u32 %s369_s18, 4  ;;  %s1913_s27 = scalar_lea.hbm %s1969_s7, %s1225_s17  ;;  %s1906_s21 = int_to_ptr.vmem [resolvable:$true] %s1020_s21 }
  0x70   : > { %v390_v5 = vadd.f32 %v386_v4, %v385_v2  ;;  %v1317_v7 = vld [vmem:[#allocation7] ss:$8 sps:$4 sm:$0xff]   ;;  %v1318_v8 = vld [vmem:[#allocation7 + $0x14] ss:$8 sps:$4 sm:$0xff]   ;;  %682 = vmatprep.subr.bf16.mxu0 %v1315_v6  ;;  %v1320_v9 = vld [vmem:[#allocation7 + $0x10] ss:$8 sps:$4 sm:$0xff]  }
  0x71   : > { %388 = vadd.xlane.f32.xlu0 %v387_v3  ;;  %683 = vmatpush1.bf16.msra.mxu0 %v1317_v7  ;;  %v1321_v10 = vld [vmem:[#allocation7 + $0x24] ss:$8 sps:$4 sm:$0xff]   ;;  %v1323_v11 = vld [vmem:[#allocation7 + $0x20] ss:$8 sps:$4 sm:$0xff]   ;;  %v1324_v12 = vld [vmem:[#allocation7 + $0x34] ss:$8 sps:$4 sm:$0xff]  }
  0x72   : > { %684 = vmatprep.subr.bf16.mxu0 %v1318_v8  ;;  %v1326_v13 = vld [vmem:[#allocation7 + $0x30] ss:$8 sps:$4 sm:$0xff]   ;;  %v1327_v14 = vld [vmem:[#allocation7 + $0x44] ss:$8 sps:$4 sm:$0xff]   ;;  %v1329_v15 = vld [vmem:[#allocation7 + $0x40] ss:$8 sps:$4 sm:$0xff]  }
  0x73   : > { %v1330_v16 = vld [vmem:[#allocation7 + $0x54] ss:$8 sps:$4 sm:$0xff]   ;;  %v1332_v17 = vld [vmem:[#allocation7 + $0x50] ss:$8 sps:$4 sm:$0xff]   ;;  %v1333_v18 = vld [vmem:[#allocation7 + $0x64] ss:$8 sps:$4 sm:$0xff]  }
  0x74   : > { %v1335_v19 = vld [vmem:[#allocation7 + $0x60] ss:$8 sps:$4 sm:$0xff]   ;;  %v1336_v20 = vld [vmem:[#allocation7 + $0x74] ss:$8 sps:$4 sm:$0xff]   ;;  %v1338_v21 = vld [vmem:[#allocation7 + $0x70] ss:$8 sps:$4 sm:$0xff]  }
  0x75   : > { %391 = vadd.xlane.f32.xlu0 %v390_v5  ;;  %685 = vmatpush1.bf16.msra.mxu0 %v1320_v9  ;;  %v1339_v22 = vld [vmem:[#allocation7 + $0x84] ss:$8 sps:$4 sm:$0xff]   ;;  %v1341_v23 = vld [vmem:[#allocation7 + $0x80] ss:$8 sps:$4 sm:$0xff]   ;;  %v1342_v38 = vld [vmem:[#allocation7 + $0x94] ss:$8 sps:$4 sm:$0xff]  }
  0x76   : > { %686 = vmatprep.subr.bf16.mxu0 %v1321_v10  ;;  %v1344_v39 = vld [vmem:[#allocation7 + $0x90] ss:$8 sps:$4 sm:$0xff]   ;;  %v1345_v40 = vld [vmem:[#allocation7 + $0xa4] ss:$8 sps:$4 sm:$0xff]   ;;  %v1347_v41 = vld [vmem:[#allocation7 + $0xa0] ss:$8 sps:$4 sm:$0xff]   ;;  %v422_v10 = vlaneseq }
  0x77   : > { %v1348_v42 = vld [vmem:[#allocation7 + $0xb4] ss:$8 sps:$4 sm:$0xff]   ;;  %v1350_v43 = vld [vmem:[#allocation7 + $0xb0] ss:$8 sps:$4 sm:$0xff]   ;;  %v1351_v44 = vld [vmem:[#allocation7 + $0xc4] ss:$8 sps:$4 sm:$0xff]  }
  0x78   : > { %v1353_v45 = vld [vmem:[#allocation7 + $0xc0] ss:$8 sps:$4 sm:$0xff]   ;;  %v1354_v46 = vld [vmem:[#allocation7 + $0xd4] ss:$8 sps:$4 sm:$0xff]   ;;  %v1356_v47 = vld [vmem:[#allocation7 + $0xd0] ss:$8 sps:$4 sm:$0xff]  }
  0x79   : > { %687 = vmatpush1.bf16.msra.mxu0 %v1323_v11  ;;  %v1357_v48 = vld [vmem:[#allocation7 + $0xe4] ss:$8 sps:$4 sm:$0xff]   ;;  %v1359_v49 = vld [vmem:[#allocation7 + $0xe0] ss:$8 sps:$4 sm:$0xff]   ;;  %v1360_v50 = vld [vmem:[#allocation7 + $0xf4] ss:$8 sps:$4 sm:$0xff]  }
  0x7a   : > { %688 = vmatprep.subr.bf16.mxu0 %v1324_v12  ;;  %v1362_v51 = vld [vmem:[#allocation7 + $0xf0] ss:$8 sps:$4 sm:$0xff]   ;;  %v1363_v52 = vld [vmem:[#allocation9 + $0x4] ss:$8 sps:$4 sm:$0xff]   ;;  %v1365_v53 = vld [vmem:[#allocation9] ss:$8 sps:$4 sm:$0xff]  }
  0x7b   : > { %v1366_v54 = vld [vmem:[#allocation9 + $0x14] ss:$8 sps:$4 sm:$0xff]   ;;  %943 = vmatprep.subr.bf16.mxu1 %v1363_v52  ;;  %v1368_v55 = vld [vmem:[#allocation9 + $0x10] ss:$8 sps:$4 sm:$0xff]   ;;  %v1369_v56 = vld [vmem:[#allocation9 + $0x24] ss:$8 sps:$4 sm:$0xff]  }
  0x7c   : > { %944 = vmatpush1.bf16.msra.mxu1 %v1365_v53  ;;  %v1371_v57 = vld [vmem:[#allocation9 + $0x20] ss:$8 sps:$4 sm:$0xff]   ;;  %v1372_v58 = vld [vmem:[#allocation9 + $0x34] ss:$8 sps:$4 sm:$0xff]   ;;  %v1374_v59 = vld [vmem:[#allocation9 + $0x30] ss:$8 sps:$4 sm:$0xff]  }
  0x7d   : > { %689 = vmatpush1.bf16.msra.mxu0 %v1326_v13  ;;  %945 = vmatprep.subr.bf16.mxu1 %v1366_v54  ;;  %v1375_v60 = vld [vmem:[#allocation9 + $0x44] ss:$8 sps:$4 sm:$0xff]   ;;  %v1377_v61 = vld [vmem:[#allocation9 + $0x40] ss:$8 sps:$4 sm:$0xff]   ;;  %v1378_v62 = vld [vmem:[#allocation9 + $0x54] ss:$8 sps:$4 sm:$0xff]  }
  0x7e   : > { %690 = vmatprep.subr.bf16.mxu0 %v1327_v14  ;;  %v1380_v63 = vld [vmem:[#allocation9 + $0x50] ss:$8 sps:$4 sm:$0xff]   ;;  %v1389_v5 = vld [vmem:[#allocation9 + $0x80] ss:$8 sps:$4 sm:$0xff]   ;;  %v1390_v6 = vld [vmem:[#allocation9 + $0x94] ss:$8 sps:$4 sm:$0xff]  }
  0x7f   : > { %v1386_v3 = vld [vmem:[#allocation9 + $0x70] ss:$8 sps:$4 sm:$0xff]   ;;  %v423_v14 = vshrl.u32 %v422_v10, 7  ;;  %v1405_v52 = vld [vmem:[#allocation9 + $0xe4] ss:$8 sps:$4 sm:$0xff]   ;;  %s1006_s10 = scalar_lea.sflag [#allocation6], %s1835_s30 }
  0x80   : > { %946 = vmatpush1.bf16.msra.mxu1 %v1368_v55  ;;  %v1392_v7 = vld [vmem:[#allocation9 + $0x90] ss:$8 sps:$4 sm:$0xff]   ;;  %v1407_v53 = vld [vmem:[#allocation9 + $0xe0] ss:$8 sps:$4 sm:$0xff]   ;;  %v1408_v54 = vld [vmem:[#allocation9 + $0xf4] ss:$8 sps:$4 sm:$0xff]  }
  0x81   : > { %691 = vmatpush1.bf16.msra.mxu0 %v1329_v15  ;;  %947 = vmatprep.subr.bf16.mxu1 %v1369_v56  ;;  %v1410_v55 = vld [vmem:[#allocation9 + $0xf0] ss:$8 sps:$4 sm:$0xff]   ;;  %v510_v56 = vld [vmem:[%s1966_s4] sm:$0x3]  ;;  %s1509_s9 = scalar_lea.vmem %s1906_s21, 512  ;;  %p1988_p12 = scmp.ne.s32.totalorder %s1984_s16, 0 }
  0x82   : > { %692 = vmatprep.subr.bf16.mxu0 %v1330_v16  ;;  %v424_v16 = vsub.s32 0, %v423_v14  ;;  %p1510_p8 = scmp.ne.s32.totalorder %s1906_s21, %s1509_s9  ;;  %s1604_s11 = smov [#allocation10]  }
  0x83   : > { %s1513_s13 = sshll.u32 %s1604_s11, 4  ;;  %s1514_s13 = int_to_ptr.vmem [resolvable:$false] %s1513_s13 }
  0x84   : > { %948 = vmatpush1.bf16.msra.mxu1 %v1371_v57  ;;  %v515_v57 = vrot.slane %v510_v56, %v424_v16  ;;  %p1511_p1 = pnand %p1510_p8, %p1988_p12  ;;  %s1515_s14 = scalar_lea.vmem %s1514_s13, 1024 }
  0x85   : > { %693 = vmatpush1.bf16.msra.mxu0 %v1332_v17  ;;  %949 = vmatprep.subr.bf16.mxu1 %v1372_v58  ;;  %v420_v17 = vld [vmem:[%s1963_s1] sm:$0x3]  ;;  %p1516_p3 = scmp.lt.s32.totalorder %s1906_s21, %s1514_s13  ;;  %p1517_p5 = scmp.lt.s32.totalorder %s1515_s14, %s1509_s9 }
  0x86   : > { %694 = vmatprep.subr.bf16.mxu0 %v1333_v18  ;;  %v1868_v18 = vsub.s32 1, %v423_v14  ;;  %p1512_p10 = pneg %p1511_p1 }
  0x87   : > { %p1518_p9 = por %p1517_p5, %p1516_p3 }
  0x88   : > { %950 = vmatpush1.bf16.msra.mxu1 %v1374_v59  ;;  %v519_v58 = vrot.slane %v510_v56, %v1868_v18 }
  0x89   : > { %695 = vmatpush1.bf16.msra.mxu0 %v1335_v19  ;;  %951 = vmatprep.subr.bf16.mxu1 %v1375_v60  ;;  %v436_v19 = vld [vmem:[%s1964_s2] sm:$0x3]  ;;  %p1519_p11 = pnand %p1518_p9, %p1512_p10 }
  0x8a   : > { %696 = vmatprep.subr.bf16.mxu0 %v1336_v20  ;;  %v425_v20 = vrot.slane %v420_v17, %v424_v16 }
  0x8c   : > { %952 = vmatpush1.bf16.msra.mxu1 %v1377_v61 }
  0x8d   : > { %697 = vmatpush1.bf16.msra.mxu0 %v1338_v21  ;;  %953 = vmatprep.subr.bf16.mxu1 %v1378_v62 }
  0x8e   : > { %698 = vmatprep.subr.bf16.mxu0 %v1339_v22  ;;  %v1876_v22 = vld [vmem:[%s1968_s6] sm:$0x3] }
  0x90   : > { %954 = vmatpush1.bf16.msra.mxu1 %v1380_v63 }
  0x91   : > { %699 = vmatpush1.bf16.msra.mxu0 %v1341_v23 }
  0x92   : > { %700 = vmatprep.subr.bf16.mxu0 %v1342_v38 }
  0x95   : > { %701 = vmatpush1.bf16.msra.mxu0 %v1344_v39 }
  0x96   : > { %702 = vmatprep.subr.bf16.mxu0 %v1345_v40 }
  0x99   : > { %703 = vmatpush1.bf16.msra.mxu0 %v1347_v41 }
  0x9a   : > { %704 = vmatprep.subr.bf16.mxu0 %v1348_v42 }
  0x9d   : > { %705 = vmatpush1.bf16.msra.mxu0 %v1350_v43 }
  0x9e   : > { %706 = vmatprep.subr.bf16.mxu0 %v1351_v44 }
  0xa1   : > { %707 = vmatpush1.bf16.msra.mxu0 %v1353_v45 }
  0xa2   : > { %708 = vmatprep.subr.bf16.mxu0 %v1354_v46  ;;  %v1396_v46 = vld [vmem:[#allocation9 + $0xb4] ss:$8 sps:$4 sm:$0xff]  }
  0xa5   : > { %709 = vmatpush1.bf16.msra.mxu0 %v1356_v47  ;;  %v1398_v47 = vld [vmem:[#allocation9 + $0xb0] ss:$8 sps:$4 sm:$0xff]  }
  0xa6   : > { %710 = vmatprep.subr.bf16.mxu0 %v1357_v48  ;;  %v1399_v48 = vld [vmem:[#allocation9 + $0xc4] ss:$8 sps:$4 sm:$0xff]  }
  0xa9   : > { %711 = vmatpush1.bf16.msra.mxu0 %v1359_v49  ;;  %v1401_v49 = vld [vmem:[#allocation9 + $0xc0] ss:$8 sps:$4 sm:$0xff]  }
  0xaa   : > { %712 = vmatprep.subr.bf16.mxu0 %v1360_v50  ;;  %v1402_v50 = vld [vmem:[#allocation9 + $0xd4] ss:$8 sps:$4 sm:$0xff]  }
  0xad   : > { %713 = vmatpush1.bf16.msra.mxu0 %v1362_v51  ;;  %v1404_v51 = vld [vmem:[#allocation9 + $0xd0] ss:$8 sps:$4 sm:$0xff]  }
  0xfe   : > { %v389_v24 = vpop.xlane.xlu0 %388 }
  0xff   : > { %v394_v25 = vmul.f32 0.00390625, %v389_v24  ;;  %v429_v24 = vrot.slane %v420_v17, %v1868_v18 }
 0x101   : > { %v1849_v26 = vsub.f32 %v383_v0, %v394_v25  ;;  %v1851_v27 = vsub.f32 %v384_v1, %v394_v25  ;;  %v1381_v0 = vld [vmem:[#allocation9 + $0x64] ss:$8 sps:$4 sm:$0xff]   ;;  %v1383_v1 = vld [vmem:[#allocation9 + $0x60] ss:$8 sps:$4 sm:$0xff]   ;;  %v441_v25 = vrot.slane %v436_v19, %v424_v16 }
 0x102   : > { %v392_v28 = vpop.xlane.xlu0 %391  ;;  %955 = vmatprep.subr.bf16.mxu1 %v1381_v0 }
 0x103   : > { %v395_v29 = vmul.f32 0.00390625, %v392_v28  ;;  %v400_v30 = vmul.f32 %v1849_v26, %v1849_v26  ;;  %v401_v31 = vmul.f32 %v1851_v27, %v1851_v27  ;;  %956 = vmatpush1.bf16.msra.mxu1 %v1383_v1 }
 0x105   : > { %v1857_v32 = vsub.f32 %v385_v2, %v395_v29  ;;  %v1859_v33 = vsub.f32 %v386_v4, %v395_v29  ;;  %v404_v34 = vadd.f32 %v401_v31, %v400_v30  ;;  %v1384_v2 = vld [vmem:[#allocation9 + $0x74] ss:$8 sps:$4 sm:$0xff]   ;;  %v1387_v4 = vld [vmem:[#allocation9 + $0x84] ss:$8 sps:$4 sm:$0xff]   ;;  %v461_v30 = vrot.slane %v1876_v22, %v424_v16 }
 0x106   : > { %957 = vmatprep.subr.bf16.mxu1 %v1384_v2 }
 0x107   : > { %405 = vadd.xlane.f32.xlu1 %v404_v34  ;;  %v402_v35 = vmul.f32 %v1857_v32, %v1857_v32  ;;  %v403_v36 = vmul.f32 %v1859_v33, %v1859_v33  ;;  %958 = vmatpush1.bf16.msra.mxu1 %v1386_v3  ;;  %v445_v34 = vrot.slane %v436_v19, %v1868_v18 }
 0x108   : > { %959 = vmatprep.subr.bf16.mxu1 %v1387_v4 }
 0x109   : > { %v407_v37 = vadd.f32 %v403_v36, %v402_v35 }
 0x10b   : > { %408 = vadd.xlane.f32.xlu1 %v407_v37  ;;  %960 = vmatpush1.bf16.msra.mxu1 %v1389_v5 }
 0x10c   : > { %961 = vmatprep.subr.bf16.mxu1 %v1390_v6 }
 0x10f   : > { %962 = vmatpush1.bf16.msra.mxu1 %v1392_v7 }
 0x194   : > { %v406_v8 = vpop.xlane.xlu1 %405 }
 0x195   : > { %v410_v9 = vmul.f32 0.00390625, %v406_v8 }
 0x197   : > { %v412_v11 = vadd.f32 1e-05, %v410_v9 }
 0x198   : > { %v409_v12 = vpop.xlane.xlu1 %408 }
 0x199   : > { %1411 = vrsqrt.f32 %v412_v11  ;;  %v411_v13 = vmul.f32 0.00390625, %v409_v12 }
 0x19b   : > { %v413_v15 = vadd.f32 1e-05, %v411_v13 }
 0x19d   : > { %1413 = vrsqrt.f32 %v413_v15 }
 0x1a3   : > { %v1412_v21 = vpop.eup %1411 }
 0x1a4   : > { %v417_v23 = vmul.f32 %v1412_v21, %v1851_v27  ;;  %v416_v28 = vmul.f32 %v1412_v21, %v1849_v26 }
 0x1a6   : > { %v432_v29 = vmul.f32 %v425_v20, %v416_v28  ;;  %v433_v36 = vmul.f32 %v429_v24, %v417_v23 }
 0x1a7   : > { %v1414_v31 = vpop.eup %1413 }
 0x1a8   : > { %v419_v35 = vmul.f32 %v1414_v31, %v1859_v33  ;;  %v418_v37 = vmul.f32 %v1414_v31, %v1857_v32  ;;  %v448_v38 = vadd.f32 %v441_v25, %v432_v29  ;;  %v1887_v41 = vadd.f32 %v445_v34, %v433_v36  ;;  %v1393_v33 = vld [vmem:[#allocation9 + $0xa4] ss:$8 sps:$4 sm:$0xff]   ;;  %v1395_v32 = vld [vmem:[#allocation9 + $0xa0] ss:$8 sps:$4 sm:$0xff]  }
 0x1a9   : > { %963 = vmatprep.subr.bf16.mxu1 %v1393_v33  ;;  %v465_v29 = vrot.slane %v1876_v22, %v1868_v18 }
 0x1aa   : > { %v435_v39 = vmul.f32 %v429_v24, %v419_v35  ;;  %v434_v40 = vmul.f32 %v425_v20, %v418_v37  ;;  %v1885_v27 = vadd.f32 %v461_v30, %v448_v38  ;;  %964 = vmatpush1.bf16.msra.mxu1 %v1395_v32 }
 0x1ab   : > { %965 = vmatprep.subr.bf16.mxu1 %v1396_v46  ;;  %v469_v31 = vadd.f32 %v465_v29, %v1887_v41 }
 0x1ac   : > { %v1889_v42 = vadd.f32 %v445_v34, %v435_v39  ;;  %v450_v26 = vadd.f32 %v441_v25, %v434_v40 }
 0x1ae   : > { %v453_v43 = vpack.c.bf16 %v1889_v42, %v1887_v41  ;;  %v452_v44 = vpack.c.bf16 %v450_v26, %v448_v38  ;;  %v1893_v45 = vadd.f32 %v461_v30, %v450_v26  ;;  %966 = vmatpush1.bf16.msra.mxu1 %v1398_v47  ;;  %v471_v18 = vadd.f32 %v465_v29, %v1889_v42 }
 0x1af   : > { %967 = vmatprep.subr.bf16.mxu1 %v1399_v48 }
 0x1b0   : > { %714 = vmatprep.mubr.bf16.mxu0 %v453_v43 }
 0x1b1   : > { %715 = vmatmul.mubr.bf16.vlgmr.msra.gmra.mrb[0].mxu0 %v452_v44 }
 0x1b2   : > { %968 = vmatpush1.bf16.msra.mxu1 %v1401_v49 }
 0x1b3   : > { %969 = vmatprep.subr.bf16.mxu1 %v1402_v50 }
 0x1b6   : > { %970 = vmatpush1.bf16.msra.mxu1 %v1404_v51 }
 0x1b7   : > { %971 = vmatprep.subr.bf16.mxu1 %v1405_v52 }
 0x1ba   : > { %972 = vmatpush1.bf16.msra.mxu1 %v1407_v53 }
 0x1bb   : > { %973 = vmatprep.subr.bf16.mxu1 %v1408_v54 }
 0x1be   : > { %974 = vmatpush1.bf16.msra.mxu1 %v1410_v55 }
 0x284   : > { %v716_v59 = vpop.f32.mrb[0].mxu0 }
 0x285   : > { %v717_v60 = vadd.f32 %v716_v59, %v515_v57  ;;  %v718_v61 = vpop.f32.mrb[1].mxu0 }
 0x286   : > { %v719_v62 = vadd.f32 %v718_v61, %v519_v58  ;;  %v720_v63 = vpop.f32.mrb[2].mxu0 }
 0x287   : > { %v729_v0 = vmul.f32 0.70710677, %v717_v60  ;;  %v721_v1 = vadd.f32 %v720_v63, %v515_v57  ;;  %v722_v2 = vpop.f32.mrb[3].mxu0  ;;  %v725_v13 = vmul.f32 0.5, %v717_v60 }
 0x288   : > { %v730_v3 = vmul.f32 0.70710677, %v719_v62  ;;  %v723_v4 = vadd.f32 %v722_v2, %v519_v58  ;;  %v726_v16 = vmul.f32 0.5, %v719_v62 }
 0x289   : > { %1415 = verf.f32 %v729_v0  ;;  %v731_v5 = vmul.f32 0.70710677, %v721_v1  ;;  %v727_v14 = vmul.f32 0.5, %v721_v1 }
 0x28a   : > { %1417 = verf.f32 %v730_v3  ;;  %v732_v6 = vmul.f32 0.70710677, %v723_v4  ;;  %v728_v17 = vmul.f32 0.5, %v723_v4 }
 0x28b   : > { %1419 = verf.f32 %v731_v5 }
 0x28c   : > { %1421 = verf.f32 %v732_v6 }
 0x293   : > { %v1416_v7 = vpop.eup %1415 }
 0x294   : > { %v1418_v8 = vpop.eup %1417  ;;  %v737_v9 = vadd.f32 1.0, %v1416_v7 }
 0x295   : > { %v1420_v10 = vpop.eup %1419  ;;  %v738_v11 = vadd.f32 1.0, %v1418_v8 }
 0x296   : > { %v1422_v12 = vpop.eup %1421  ;;  %v739_v15 = vadd.f32 1.0, %v1420_v10  ;;  %v741_v20 = vmul.f32 %v737_v9, %v725_v13 }
 0x297   : > { %v740_v19 = vadd.f32 1.0, %v1422_v12  ;;  %v742_v23 = vmul.f32 %v738_v11, %v726_v16 }
 0x298   : > { %v743_v21 = vmul.f32 %v739_v15, %v727_v14 }
 0x299   : > { %v744_v24 = vmul.f32 %v740_v19, %v728_v17 }
 0x29a   : > { %v749_v25 = vpack.c.bf16 %v743_v21, %v741_v20 }
 0x29b   : > { %v750_v28 = vpack.c.bf16 %v744_v24, %v742_v23 }
 0x29d   : > { %975 = vmatprep.mubr.bf16.mxu1 %v750_v28 }
 0x29e   : > { %976 = vmatmul.mubr.bf16.vlgmr.msra.gmra.mrb[0].mxu1 %v749_v25 }
 0x371   : > { %v977_v30 = vpop.f32.mrb[0].mxu1 }
 0x372   : > { %v986_v34 = vadd.f32 %v977_v30, %v1885_v27  ;;  %v979_v35 = vpop.f32.mrb[1].mxu1 }
 0x373   : > { %v987_v36 = vadd.f32 %v979_v35, %v469_v31  ;;  %v981_v37 = vpop.f32.mrb[2].mxu1 }
 0x374   : > { %1001 = vst [vmem:[%s369_s18] sm:$0xff] %v986_v34  ;;  %v988_v22 = vadd.f32 %v981_v37, %v1893_v45  ;;  %v983_v38 = vpop.f32.mrb[3].mxu1 }
 0x375   : > { %1002 = vst [vmem:[%s369_s18 + $0x8] sm:$0xff] %v987_v36  ;;  %v989_v39 = vadd.f32 %v983_v38, %v471_v18 }
 0x376   : > { %1003 = vst [vmem:[%s369_s18 + $0x10] sm:$0xff] %v988_v22 }
 0x377   : > { %1004 = vst [vmem:[%s369_s18 + $0x18] sm:$0xff] %v989_v39 }
 0x378   : > { %1522 = shalt.err (!%p1519_p11)
}
 0x379   : > { %s1523_s15 = scalar_lea.hbm %s1913_s27, 512  ;;  %s1527_s22 = scalar_lea.hbm %s1969_s7, 1024 }
 0x37a   : > { %p1524_p0 = scmp.ne.s32.totalorder %s1913_s27, %s1523_s15  ;;  %p1528_p6 = scmp.lt.u32.totalorder %s1913_s27, %s1969_s7 }
 0x37b   : > { %p1529_p7 = scmp.lt.u32.totalorder %s1527_s22, %s1523_s15  ;;  %p1531_p8 = scmp.lt.u32.totalorder %s1523_s15, %s1913_s27 }
 0x37c   : > { %p1525_p4 = pnand %p1524_p0, %p1988_p12 }
 0x37d   : > { %p1530_p2 = por %p1529_p7, %p1528_p6 }
 0x37e   : > { %p1526_p13 = pneg %p1525_p4 }
 0x37f   : > { %p1532_p1 = por %p1531_p8, %p1530_p2 }
 0x381   : > { %p1533_p10 = pnand %p1532_p1, %p1526_p13 }
 0x383   : > { %1536 = shalt.err (!%p1533_p10)
}
 0x384   : > { %s1605_s8 = smov 256   ;;  %s1606_s23 = smov 16  }
 0x385   : > { %1236 = dma.vmem_to_hbm [thread:$0]  (%p1988_p12), %s1906_s21, 512, %s1913_s27, %s1006_s10, %s1605_s8, %s1605_s8, %s1606_s23  }
 0x386 PF: > { %s1989_s9 = sld [smem:[#allocation14_spill]]  ;;  %s1990_s11 = sld [smem:[#allocation15_spill]] }
 0x387   : > { %p1992_p5 = scmp.ge.s32.totalorder %s1595_s29, 2 }
 0x38c   : > { %s1035_s13 = sand.u32 1, %s1989_s9   ;;  %p1991_p3 = scmp.ne.s32.totalorder %s1990_s11, 0 }
 0x38d   : > { %s1036_s14 = scalar_lea.sflag [#allocation6], %s1035_s13 }
 0x38e   : > { %p1250_p9 = pnand %p1992_p5, %p1991_p3 }
 0x390   : > { %1570 = dma.done.wait (!%p1250_p9), %s1036_s14, 512  }
 0x391   : > { %1572 = vsyncadd (!%p1250_p9), %s1036_s14, 4294966784  ;;  %s24_s29 = sadd.s32 1, %s1595_s29   ;;  %s1993_s24 = smov %s1579_s25 }
 0x392   : > { %p21_p11 = scmp.ge.s32.totalorder %s24_s29, 4   ;;  %s1994_s25 = smov %s1583_s26 }
 0x393   : > { %s1995_s26 = smov %s1789_s19  ;;  %s1996_s27 = smov %s1591_s28 }
 0x394   : > { %s1997_s28 = smov %s1999_s20  ;;  %23 = sbr.rel (!%p21_p11) target bundleno = 7 (0x7), region = 114 }
 0x39b   :  { %1041 = vsyncpa [#allocation5], 1 }
 0x39c   :  { %1043 = vsyncpa [#allocation5 + $0x1], 1 }
 0x39d   :  { %1044 = vsyncpa [#allocation8], 1 }
 0x39e   :  { %1045 = vsyncpa [#allocation6], 1 }
 0x39f   :  { %1047 = vsyncpa [#allocation6 + $0x1], 1 }

</bundles_post_ra>
